<compile_context>
chip_gen: v7x
topology: tpu7x:2x2x1
jax: 0.10.0
libtpu: 0.0.40
codegen_flags: <defaults>
</compile_context>

<pallas_src>
import functools
from enum import Enum

import jax
import jax.numpy as jnp
from jax.experimental import pallas as pl
from jax.experimental.pallas import tpu as pltpu


class OperationType(Enum):
    ADDITION = 0
    MULTIPLICATION = 1


op_to_int = {i: i.value for i in OperationType}


def operation_type_to_int(op):
    assert isinstance(op, OperationType)
    return op_to_int[op]


def _round_up(x, m):
    return ((x + m - 1) // m) * m


# Above this many batches the unrolled VPU select chain starts to saturate the
# 4 VALU slots; switch the gather to the idle MXU via a one-hot matmul.
_MXU_GATHER_MIN_B = 8


def _broadcast_kernel(ids_ref, feat_ref, glob_ref, out_ref, *,
                      op_int, num_batches, use_mxu_gather):
    # ids_ref:  (TN, 1)  int32  batch index of each point in this tile
    # feat_ref: (TN, C)         per-point features tile
    # glob_ref: (B, C)          per-batch global features (tiny, resident)
    # out_ref:  (TN, C)
    ids = ids_ref[...]                       # (TN, 1)
    feats = feat_ref[...]                    # (TN, C)
    glob = glob_ref[...]                     # (B, C)

    if use_mxu_gather:
        # One-hot (TN, B) built on the VPU, gather on the MXU — keeps the VALU
        # slot free so the kernel stays on the HBM roofline at large B.
        tn = feats.shape[0]
        b_iota = jax.lax.broadcasted_iota(jnp.int32, (tn, num_batches), 1)
        onehot = (b_iota == ids).astype(glob.dtype)          # (TN, B)
        gathered = jnp.dot(
            onehot, glob, preferred_element_type=jnp.float32
        ).astype(feats.dtype)
    else:
        # Row-wise gather glob[batch_id] via B cheap VPU selects against the
        # resident (B, C) block.  Out-of-range ids (and the garbage ids of the
        # ragged edge tile, whose rows are never stored) yield a zero row.
        gathered = jnp.zeros_like(feats)
        for b in range(num_batches):
            gathered = jnp.where(ids == b, glob[b][None, :], gathered)

    if op_int == OperationType.ADDITION.value:
        out = feats + gathered
    else:
        out = feats * gathered
    out_ref[...] = out.astype(out_ref.dtype)


def minkowski_broadcast(in_feat, glob_feat, batch_ids, operation_type, *,
                        max_tile_n=8192,
                        vmem_tile_budget_bytes=16 * 1024 * 1024):
    """Pallas implementation of MinkowskiBroadcastFunction.forward.

    in_feat:   [N, C] per-point features
    glob_feat: [B, C] per-batch global features
    batch_ids: [N]    int batch index of each point (row of glob_feat)
    """
    assert isinstance(operation_type, OperationType)
    assert in_feat.ndim == 2 and glob_feat.ndim == 2
    assert in_feat.shape[1] == glob_feat.shape[1]
    assert in_feat.dtype == glob_feat.dtype

    N, C = in_feat.shape
    B = glob_feat.shape[0]
    assert batch_ids.shape[0] == N
    itemsize = jnp.dtype(in_feat.dtype).itemsize

    # dtype-aware minimal sublane tile (8 f32 / 16 bf16 / 32 int8-fp8).
    sublane = 8 * max(1, 4 // itemsize)

    # VMEM accounting per tile row: feat-in + out, each double-buffered, plus
    # the in-kernel temporaries (feats / gathered / out) -> ~6 copies of the
    # lane-padded row; plus the (TN, 1) int32 ids block which lane-pads to 128
    # lanes, double-buffered.
    c_vmem = _round_up(max(C, 1), 128)
    per_row_bytes = 6 * c_vmem * itemsize + 2 * 128 * 4
    budget_rows = max(
        sublane, (vmem_tile_budget_bytes // per_row_bytes) // sublane * sublane)

    # Keep the grid at >= 2 steps so v7x's two TensorCores both get work.
    half_n = _round_up(max(1, -(-N // 2)), sublane)

    tile_n = max(sublane, min(budget_rows, max_tile_n, half_n))
    # Ragged last block: no wrapper-side padding of N.  Pallas masks the edge
    # tile's writes; its OOB reads are harmless because those rows are dropped.
    grid = pl.cdiv(N, tile_n)

    ids2d = batch_ids.reshape(N, 1).astype(jnp.int32)

    kernel = functools.partial(
        _broadcast_kernel,
        op_int=operation_type.value,
        num_batches=B,
        use_mxu_gather=(B >= _MXU_GATHER_MIN_B),
    )

    return pl.pallas_call(
        kernel,
        out_shape=jax.ShapeDtypeStruct((N, C), in_feat.dtype),
        grid_spec=pltpu.PrefetchScalarGridSpec(
            num_scalar_prefetch=0,
            grid=(grid,),
            in_specs=[
                pl.BlockSpec((tile_n, 1), lambda i: (i, 0)),   # batch ids
                pl.BlockSpec((tile_n, C), lambda i: (i, 0)),   # point feats
                pl.BlockSpec((B, C), lambda i: (0, 0)),        # global feats
            ],
            out_specs=pl.BlockSpec((tile_n, C), lambda i: (i, 0)),
        ),
        compiler_params=pltpu.CompilerParams(
            dimension_semantics=("parallel",),
            vmem_limit_bytes=32 * 1024 * 1024,   # safe ceiling on every gen
        ),
    )(ids2d, in_feat, glob_feat)


class AbstractMinkowskiBroadcast:
    """JAX/Pallas analogue of the PyTorch AbstractMinkowskiBroadcast module."""

    def __init__(self, operation_type, dimension=-1):
        assert isinstance(operation_type, OperationType)
        assert dimension > 0, f"dimension must be a positive integer, {dimension}"
        self.operation_type = operation_type
        self.dimension = dimension

    def __call__(self, in_feat, glob_feat, batch_ids):
        return minkowski_broadcast(in_feat, glob_feat, batch_ids,
                                   self.operation_type)

    def __repr__(self):
        return self.__class__.__name__


if __name__ == "__main__":
    key = jax.random.PRNGKey(0)
    ok = True

    add_mod = AbstractMinkowskiBroadcast(OperationType.ADDITION, dimension=3)
    mul_mod = AbstractMinkowskiBroadcast(OperationType.MULTIPLICATION, dimension=3)

    # Case 1: small, "nice" shapes — sorted batch assignment (select-gather path).
    k1, k2 = jax.random.split(key)
    N, C, B = 16, 32, 2
    in_feat = jax.random.normal(k1, (N, C), dtype=jnp.float32)
    glob_feat = jax.random.normal(k2, (B, C), dtype=jnp.float32)
    batch_ids = jnp.repeat(jnp.arange(B, dtype=jnp.int32), N // B)

    out_add = jax.block_until_ready(add_mod(in_feat, glob_feat, batch_ids))
    out_mul = jax.block_until_ready(mul_mod(in_feat, glob_feat, batch_ids))
    ref_add = in_feat + glob_feat[batch_ids]
    ref_mul = in_feat * glob_feat[batch_ids]
    ok &= out_add.shape == (N, C) and out_mul.shape == (N, C)
    ok &= bool(jnp.allclose(out_add, ref_add, atol=1e-5, rtol=1e-5))
    ok &= bool(jnp.allclose(out_mul, ref_mul, atol=1e-5, rtol=1e-5))

    # Case 2: ragged / unsorted shapes (N not multiple of tile, C not multiple
    # of 128, shuffled batch ids) to exercise the ragged edge tile.
    k3, k4, k5 = jax.random.split(key, 3)
    N2, C2, B2 = 50, 40, 3
    in_feat2 = jax.random.normal(k3, (N2, C2), dtype=jnp.float32)
    glob_feat2 = jax.random.normal(k4, (B2, C2), dtype=jnp.float32)
    batch_ids2 = jax.random.randint(k5, (N2,), 0, B2, dtype=jnp.int32)

    out_add2 = jax.block_until_ready(add_mod(in_feat2, glob_feat2, batch_ids2))
    out_mul2 = jax.block_until_ready(mul_mod(in_feat2, glob_feat2, batch_ids2))
    ref_add2 = in_feat2 + glob_feat2[batch_ids2]
    ref_mul2 = in_feat2 * glob_feat2[batch_ids2]
    ok &= out_add2.shape == (N2, C2) and out_mul2.shape == (N2, C2)
    ok &= bool(jnp.allclose(out_add2, ref_add2, atol=1e-5, rtol=1e-5))
    ok &= bool(jnp.allclose(out_mul2, ref_mul2, atol=1e-5, rtol=1e-5))

    # Case 3: many batches (B >= 8) to exercise the one-hot MXU gather path.
    k6, k7, k8 = jax.random.split(key, 3)
    N3, C3, B3 = 40, 24, 10
    in_feat3 = jax.random.normal(k6, (N3, C3), dtype=jnp.float32)
    glob_feat3 = jax.random.normal(k7, (B3, C3), dtype=jnp.float32)
    batch_ids3 = jax.random.randint(k8, (N3,), 0, B3, dtype=jnp.int32)

    out_add3 = jax.block_until_ready(add_mod(in_feat3, glob_feat3, batch_ids3))
    out_mul3 = jax.block_until_ready(mul_mod(in_feat3, glob_feat3, batch_ids3))
    ref_add3 = in_feat3 + glob_feat3[batch_ids3]
    ref_mul3 = in_feat3 * glob_feat3[batch_ids3]
    ok &= bool(jnp.allclose(out_add3, ref_add3, atol=1e-5, rtol=1e-5))
    ok &= bool(jnp.allclose(out_mul3, ref_mul3, atol=1e-5, rtol=1e-5))

    assert ok
    print("KERNEL_OK")
</pallas_src>

<mosaic_0001>
module attributes {stable_mosaic.version = 11 : i64} {
  func.func @_broadcast_kernel(%arg0: i32, %arg1: memref<8x1xi32, #tpu.memory_space<vmem>>, %arg2: memref<8x32xf32, #tpu.memory_space<vmem>>, %arg3: memref<2x32xf32, #tpu.memory_space<vmem>>, %arg4: memref<8x32xf32, #tpu.memory_space<vmem>>) attributes {dimension_semantics = [#tpu.dimension_semantics<parallel>], iteration_bounds = array<i64: 2>, scalar_prefetch = 0 : i64, scratch_operands = 0 : i64, tpu.core_type = #tpu.core_type<tc>, window_params = [{transform_indices = @transform_0, window_bounds = array<i64: 8, 1>}, {transform_indices = @transform_1, window_bounds = array<i64: 8, 32>}, {pipeline_mode = #tpu.pipeline_mode<synchronous>, transform_indices = @transform_2, window_bounds = array<i64: 2, 32>}, {transform_indices = @transform_3, window_bounds = array<i64: 8, 32>}]} {
    %c0 = arith.constant 0 : index
    %c0_0 = arith.constant 0 : index
    %0 = vector.load %arg1[%c0, %c0_0] : memref<8x1xi32, #tpu.memory_space<vmem>>, vector<8x1xi32>
    %c0_1 = arith.constant 0 : index
    %c0_2 = arith.constant 0 : index
    %1 = vector.load %arg2[%c0_1, %c0_2] : memref<8x32xf32, #tpu.memory_space<vmem>>, vector<8x32xf32>
    %c0_3 = arith.constant 0 : index
    %c0_4 = arith.constant 0 : index
    %2 = vector.load %arg3[%c0_3, %c0_4] : memref<2x32xf32, #tpu.memory_space<vmem>>, vector<2x32xf32>
    %cst = arith.constant 0.000000e+00 : f32
    %3 = vector.broadcast %cst : f32 to vector<8x32xf32>
    %c0_i32 = arith.constant 0 : i32
    %4 = vector.broadcast %c0_i32 : i32 to vector<8x1xi32>
    %5 = arith.cmpi eq, %0, %4 : vector<8x1xi32>
    %6 = vector.extract_strided_slice %2 {offsets = [0, 0], sizes = [1, 32], strides = [1, 1]} : vector<2x32xf32> to vector<1x32xf32>
    %7 = vector.shape_cast %6 : vector<1x32xf32> to vector<32xf32>
    %8 = vector.shape_cast %7 : vector<32xf32> to vector<1x32xf32>
    %9 = vector.shape_cast %5 : vector<8x1xi1> to vector<8x1xi1>
    %10 = vector.broadcast %9 : vector<8x1xi1> to vector<8x32xi1>
    %11 = vector.shape_cast %8 : vector<1x32xf32> to vector<1x32xf32>
    %12 = vector.broadcast %11 : vector<1x32xf32> to vector<8x32xf32>
    %13 = arith.select %10, %12, %3 : vector<8x32xi1>, vector<8x32xf32>
    %c1_i32 = arith.constant 1 : i32
    %14 = vector.broadcast %c1_i32 : i32 to vector<8x1xi32>
    %15 = arith.cmpi eq, %0, %14 : vector<8x1xi32>
    %16 = vector.extract_strided_slice %2 {offsets = [1, 0], sizes = [1, 32], strides = [1, 1]} : vector<2x32xf32> to vector<1x32xf32>
    %17 = vector.shape_cast %16 : vector<1x32xf32> to vector<32xf32>
    %18 = vector.shape_cast %17 : vector<32xf32> to vector<1x32xf32>
    %19 = vector.shape_cast %15 : vector<8x1xi1> to vector<8x1xi1>
    %20 = vector.broadcast %19 : vector<8x1xi1> to vector<8x32xi1>
    %21 = vector.shape_cast %18 : vector<1x32xf32> to vector<1x32xf32>
    %22 = vector.broadcast %21 : vector<1x32xf32> to vector<8x32xf32>
    %23 = arith.select %20, %22, %13 : vector<8x32xi1>, vector<8x32xf32>
    %24 = arith.addf %1, %23 : vector<8x32xf32>
    %c0_5 = arith.constant 0 : index
    %c0_6 = arith.constant 0 : index
    %25 = vector.load %arg4[%c0_5, %c0_6] : memref<8x32xf32, #tpu.memory_space<vmem>>, vector<8x32xf32>
    tpu.vector_store %arg4[%c0_5, %c0_6], %24 {strides = array<i32>} : memref<8x32xf32, #tpu.memory_space<vmem>>, vector<8x32xf32>,
    return
  }
  func.func @transform_0(%arg0: i32) -> (i32, i32) {
    %c0_i32 = arith.constant 0 : i32
    %c0_i32_0 = arith.constant 0 : i32
    return %arg0, %c0_i32 : i32, i32
  }
  func.func @transform_1(%arg0: i32) -> (i32, i32) {
    %c0_i32 = arith.constant 0 : i32
    %c0_i32_0 = arith.constant 0 : i32
    return %arg0, %c0_i32 : i32, i32
  }
  func.func @transform_2(%arg0: i32) -> (i32, i32) {
    %c0_i32 = arith.constant 0 : i32
    %c0_i32_0 = arith.constant 0 : i32
    %c0_i32_1 = arith.constant 0 : i32
    return %c0_i32, %c0_i32_0 : i32, i32
  }
  func.func @transform_3(%arg0: i32) -> (i32, i32) {
    %c0_i32 = arith.constant 0 : i32
    %c0_i32_0 = arith.constant 0 : i32
    return %arg0, %c0_i32 : i32, i32
  }
}

</mosaic_0001>

<bundles_post_ra>
// kernel: tpu_custom_call.1
= control target key start
LH: loop header
LB: loop body
LE: loop exit
PB: predicated region body
PF: predicated region fallthrough
CT: control target
= control target key end

     0   :  { %8 = vsyncpa [#allocation3], 0  ;;  %s540_s0 = inlined_call_operand.vmem [shape: s32[16,1], index: 0, kind: input, shape index: {}]   ;;  %s541_s1 = inlined_call_operand.vmem [shape: f32[16,32], index: 1, kind: input, shape index: {}]   ;;  %s542_s2 = inlined_call_operand.vmem [shape: f32[2,32], index: 2, kind: input, shape index: {}]   ;;  %s543_s3 = inlined_call_operand.hbm [shape: f32[16,32], index: 3, kind: output, shape index: {}]  }
   0x1   :  { %10 = vsyncpa [#allocation3 + $0x1], 0  ;;  %s434_s12 = smov 0   ;;  %s436_s13 = smov 0  }
   0x2   :  { %s438_s14 = smov 0   ;;  %s440_s15 = smov 0  }
   0x3 LB: > { %s455_s16 = sadd.s32 4294967295, %s410_s15   ;;  %s296_s17 = sadd.s32 4294967294, %s410_s15   ;;  %s410_s15 = sphi %s440_s15, %s549_s15   ;;  %s406_s14 = sphi %s438_s14, %s548_s14   ;;  %s402_s13 = sphi %s436_s13, %s547_s13   ;;  %s398_s12 = sphi %s434_s12, %s546_s12  }
   0x4   : > { %s459_s18 = sadd.s32 1, %s410_s15   ;;  %s96_s19 = sadd.s32 1, %s406_s14 }
   0x5   : > { %s93_s20 = ssub.s32 %s410_s15, %s459_s18  ;;  %p106_p0 = scmp.ne.s32.totalorder %s406_s14, %s402_s13 }
   0x6   : > { %p94_p1 = scmp.eq.s32.totalorder %s93_s20, 0  ;;  %p107_p2 = scmp.eq.s32.totalorder %s455_s16, 1 }
   0x7   : > { %p112_p3 = scmp.ne.s32.totalorder %s402_s13, %s398_s12  ;;  %p113_p4 = scmp.eq.s32.totalorder %s296_s17, 1 }
   0x8   : > { %s470_s21 = scalar_select %p94_p1, %s406_s14, %s96_s19  }
   0x9   : > { %p472_p5 = por %p107_p2, %p106_p0  ;;  %p476_p6 = por %p113_p4, %p112_p3 }
   0xa   : > { %p299_p7 = scmp.ge.s32.totalorder %s410_s15, 1  ;;  %p148_p8 = scmp.lt.s32.totalorder %s410_s15, 3 }
   0xc   : > { %p149_p9 = pnand %p299_p7, %p148_p8 }
   0xd   : > { %p175_p10 = scmp.lt.s32.totalorder (!%p149_p9), %s455_s16, 1  ;;  %v412_v0 = vmov (!%p149_p9), 0   ;;  %v192_v4 = vlaneseq (!%p149_p9)  ;;  %s172_s29 = sand.u32 (!%p149_p9), 1, %s402_s13   ;;  %v185_v7 = vld [vmem:[%s542_s2] sm:$0x3] (!%p149_p9)  ;;  %vm209_vm4 = vcmask (!%p149_p9), 261120  }
   0xe   : > { %152 = sbr.rel (%p149_p9) target bundleno = 178 (0xb2), region = 32  ;;  %347 = vset.pattern.permute.xlu0 (!%p149_p9), %v412_v0  ;;  %s300_s5 = sshll.u32 (!%p149_p9), %s172_s29, 3 }
   0xf   : > { %v193_v5 = vshrl.u32 (!%p149_p9), %v192_v4, 7  ;;  %s304_s9 = sshll.u32 (!%p149_p9), %s455_s16, 7  ;;  %s174_s10 = scalar_lea.vmem (!%p149_p9), [#allocation2], %s300_s5 }
  0x10   : > { %s225_s11 = sshll.u32 (!%p149_p9), %s174_s10, 4  ;;  %s498_s20 = scalar_lea.hbm (!%p149_p9), %s543_s3, %s304_s9  ;;  %s500_s11 = int_to_ptr.vmem [resolvable:$true] %s225_s11 }
  0x11   : > { %v194_v6 = vsub.s32 (!%p149_p9), 0, %v193_v5  ;;  %v205_v8 = vsub.s32 (!%p149_p9), 1, %v193_v5 }
  0x13   : > { %v195_v10 = vrot.slane (!%p149_p9), %v185_v7, %v194_v6  ;;  %v206_v11 = vrot.slane (!%p149_p9), %v185_v7, %v205_v8 }
  0x15   : > { %s176_s24 = scalar_select %p175_p10, %s455_s16, 1 }
  0x16   : > { %s348_s16 = scalar_lea.vmem %s500_s11, 128 }
  0x17   : > { %s301_s25 = sshll.u32 %s176_s24, 3  ;;  %s212_s24 = scalar_lea.sflag [#allocation3], %s172_s29 }
  0x18   : > { %s178_s28 = scalar_lea.vmem %s540_s0, %s301_s25  ;;  %s182_s8 = scalar_lea.vmem %s541_s1, %s301_s25 }
  0x19   : > { %v183_v1 = vld [vmem:[%s178_s28] sm:$0xff]  ;;  %p349_p11 = scmp.ne.s32.totalorder %s500_s11, %s348_s16  ;;  %s413_s25 = smov [#allocation2]  }
  0x1a   : > { %vm186_vm0 = vcmp.eq.s32.totalorder %v183_v1, 0  ;;  %vm197_vm1 = vcmp.eq.s32.totalorder %v183_v1, 1  ;;  %v184_v12 = vld [vmem:[%s182_s8] sm:$0xff]  ;;  %s352_s26 = sshll.u32 %s413_s25, 4  ;;  %s353_s26 = int_to_ptr.vmem [resolvable:$false] %s352_s26 }
  0x1b   : > { %v187_v2 = vsel %vm186_vm0, 1, %v412_v0  ;;  %v198_v3 = vsel %vm197_vm1, 1, %v412_v0  ;;  %p350_p12 = pnand %p349_p11, %p472_p5  ;;  %s354_s27 = scalar_lea.vmem %s353_s26, 256 }
  0x1c   : > { %189 = vperm.xlu0 %347, %v187_v2   ;;  %p355_p0 = scmp.lt.s32.totalorder %s500_s11, %s353_s26  ;;  %p356_p1 = scmp.lt.s32.totalorder %s354_s27, %s348_s16 }
  0x1d   : > { %p351_p13 = pneg %p350_p12 }
  0x1e   : > { %p357_p2 = por %p356_p1, %p355_p0 }
  0x20   : > { %200 = vperm.xlu0 %347, %v198_v3   ;;  %p358_p3 = pnand %p357_p2, %p351_p13 }
  0x9b   : > { %v190_v9 = vpop.permute.xlu0 %189 }
  0x9c   : > { %vm191_vm2 = vcmp.eq.s32.totalorder %v190_v9, 1 }
  0x9d   : > { %v196_v14 = vsel %vm191_vm2, %v195_v10, 0.0 }
  0x9f   : > { %v201_v13 = vpop.permute.xlu0 %200 }
  0xa0   : > { %vm202_vm3 = vcmp.eq.s32.totalorder %v201_v13, 1 }
  0xa1   : > { %v207_v15 = vsel %vm202_vm3, %v206_v11, %v196_v14 }
  0xa2   : > { %v208_v16 = vadd.f32 %v207_v15, %v184_v12 }
  0xa4   : > { %210 = vst.msk [vmem:[%s174_s10] sm:$0xff] %vm209_vm4, %v208_v16 }
  0xa5   : > { %361 = shalt.err (!%p358_p3)
}
  0xa6   : > { %s362_s28 = scalar_lea.hbm %s498_s20, 128  ;;  %s366_s4 = scalar_lea.hbm %s543_s3, 256 }
  0xa7   : > { %p363_p4 = scmp.ne.s32.totalorder %s498_s20, %s362_s28  ;;  %p367_p9 = scmp.lt.u32.totalorder %s498_s20, %s543_s3 }
  0xa8   : > { %p368_p10 = scmp.lt.u32.totalorder %s366_s4, %s362_s28  ;;  %p370_p12 = scmp.lt.u32.totalorder %s362_s28, %s498_s20 }
  0xa9   : > { %p364_p7 = pnand %p363_p4, %p472_p5 }
  0xaa   : > { %p369_p11 = por %p368_p10, %p367_p9 }
  0xab   : > { %p365_p8 = pneg %p364_p7 }
  0xac   : > { %p371_p13 = por %p370_p12, %p369_p11 }
  0xae   : > { %p372_p0 = pnand %p371_p13, %p365_p8 }
  0xb0   : > { %375 = shalt.err (!%p372_p0)
}
  0xb1   : > { %307 = dma.vmem_to_hbm [thread:$0]  (%p472_p5), %s500_s11, 128, %s498_s20, %s212_s24  }
  0xb2 PF: > { %p313_p1 = scmp.ge.s32.totalorder %s410_s15, 2  ;;  %s237_s7 = sand.u32 1, %s398_s12  }
  0xb3   : > { %s238_s8 = scalar_lea.sflag [#allocation3], %s237_s7 }
  0xb4   : > { %p310_p2 = pnand %p313_p1, %p476_p6 }
  0xb6   : > { %393 = dma.done.wait (!%p310_p2), %s238_s8, 128  }
  0xb7   : > { %395 = vsyncadd (!%p310_p2), %s238_s8, 4294967168  ;;  %p13_p3 = scmp.ge.s32.totalorder %s459_s18, 4   ;;  %s546_s12 = smov %s402_s13 }
  0xb8   : > { %s547_s13 = smov %s406_s14  ;;  %s548_s14 = smov %s470_s21 }
  0xb9   : > { %s549_s15 = smov %s459_s18  ;;  %15 = sbr.rel (!%p13_p3) target bundleno = 3 (0x3), region = 70 }
  0xc0   :  { %243 = vsyncpa [#allocation3], 1 }
  0xc1   :  { %245 = vsyncpa [#allocation3 + $0x1], 1 }

</bundles_post_ra>
